<compile_context>
chip_gen: v5e
topology: v5e:2x2
jax: 0.10.0
libtpu: 0.0.40
codegen_flags: <defaults>
</compile_context>

<pallas_src>
import functools

import jax
import jax.numpy as jnp
from jax import lax
from jax.experimental import pallas as pl
from jax.experimental.pallas import tpu as pltpu


def _round_up(v, m):
    return (v + m - 1) // m * m


def _sublane(itemsize):
    # Sublane packing granularity per element width.
    return {4: 8, 2: 16, 1: 32}.get(itemsize, 8)


def _choose_row_tile(n, c, itemsize):
    """Pick the row-tile height TN from a padded-VMEM byte budget."""
    sub = _sublane(itemsize)
    c_pad = _round_up(c, 128)                      # lane padding of the logits block
    per_row_bytes = c_pad * itemsize + 128 * 4     # + padded (TN,1) int32 target row
    budget_bytes = 6 * 1024 * 1024                 # per grid step; x2 when double-buffered
    tn = max(sub, (budget_bytes // per_row_bytes) // sub * sub)

    n_pad = _round_up(n, sub)
    tn = min(tn, n_pad)

    # Keep >= ~4 grid steps when the problem is large enough so the "parallel"
    # row axis shards across both TensorCores on v7x (and the pipeline has
    # something to overlap everywhere else).
    target_tiles = 4
    if n_pad >= target_tiles * sub:
        tn = min(tn, _round_up(pl.cdiv(n_pad, target_tiles), sub))
    return max(sub, tn)


def _label_smoothing_kernel(x_ref, tgt_ref, psum_ref, *,
                            confidence, smooth_over_c, n_rows, mask_partial):
    x = x_ref[...].astype(jnp.float32)                     # (TN, C)
    tgt = tgt_ref[...]                                     # (TN, 1) int32
    tn, c = x.shape

    # log-softmax pieces; the (TN, C) logprobs tensor is never materialized.
    m = jnp.max(x, axis=-1, keepdims=True)                            # XLU red. 1
    shifted = x - m
    lse = jnp.log(jnp.sum(jnp.exp(shifted), axis=-1, keepdims=True))  # XLU red. 2

    # Fused gather + smooth term (confidence + smoothing == 1):
    #   per_row = lse - sum(shifted * (smoothing/C + confidence * onehot))
    # Weights come straight out of a select: no int->f32 convert, no extra
    # per-element mul/add.
    col_ids = lax.broadcasted_iota(jnp.int32, (tn, c), 1)
    w = jnp.where(col_ids == tgt, confidence + smooth_over_c, smooth_over_c)
    wsum = jnp.sum(shifted * w, axis=-1, keepdims=True)               # XLU red. 3

    per_row = lse - wsum                                   # (TN, 1)

    if mask_partial:
        # Only when n % TN != 0 (trace-time).  Padded-row garbage stays
        # row-local and the select drops it (selects do not propagate NaN/Inf
        # from the unselected operand), so no full-tile masking of x is needed.
        row_ids = (lax.broadcasted_iota(jnp.int32, (tn, 1), 0)
                   + pl.program_id(0) * tn)
        per_row = jnp.where(row_ids < n_rows, per_row, 0.0)

    psum_ref[0, 0] = jnp.sum(per_row)


def label_smoothing_loss(x, target, smoothing=0.1):
    """x: (N, C) float logits, target: (N,) int class indices -> scalar loss.

    Semantics match the reference module: eps/C smoothing mass over all
    classes (including the target), mean over the batch, no ignore_index.
    """
    n, c = x.shape
    smoothing = float(smoothing)
    confidence = 1.0 - smoothing
    itemsize = jnp.dtype(x.dtype).itemsize
    tgt2d = target.astype(jnp.int32).reshape(n, 1)

    tn = _choose_row_tile(n, c, itemsize)
    num_tiles = pl.cdiv(n, tn)
    mask_partial = (n % tn) != 0

    kernel = functools.partial(
        _label_smoothing_kernel,
        confidence=confidence,
        smooth_over_c=smoothing / float(c),
        n_rows=n,
        mask_partial=mask_partial,
    )

    # Triple-buffer the logits stream when per-block DMAs are short relative
    # to fixed DMA issue/wait cost (small C) and the grid is long enough;
    # otherwise the default double buffer is plenty.
    padded_block_bytes = tn * _round_up(c, 128) * itemsize
    if num_tiles >= 3 and padded_block_bytes < (1 << 20):
        x_spec = pl.BlockSpec((tn, c), lambda i: (i, 0),
                              pipeline_mode=pl.Buffered(3))
    else:
        x_spec = pl.BlockSpec((tn, c), lambda i: (i, 0))

    cost = pl.CostEstimate(
        flops=5 * n * c,
        transcendentals=n * c,
        bytes_accessed=n * c * itemsize + n * 4 + num_tiles * 4,
    )

    partials = pl.pallas_call(
        kernel,
        out_shape=jax.ShapeDtypeStruct((num_tiles, 1), jnp.float32),
        grid=(num_tiles,),
        in_specs=[
            x_spec,                                     # logits row tile
            pl.BlockSpec((tn, 1), lambda i: (i, 0)),    # target row tile
        ],
        out_specs=pl.BlockSpec((1, 1), lambda i: (i, 0),
                               memory_space=pltpu.SMEM),
        compiler_params=pltpu.CompilerParams(
            dimension_semantics=("parallel",),
            vmem_limit_bytes=48 * 1024 * 1024,          # safe on v7x's 64 MiB VMEM
        ),
        cost_estimate=cost,
    )(x, tgt2d)

    # Final mean in plain JAX; 1/N precomputed so there is no divide.
    return jnp.sum(partials) * jnp.float32(1.0 / float(n))


def _reference(x, target, smoothing=0.1):
    confidence = 1.0 - smoothing
    logprobs = jax.nn.log_softmax(x.astype(jnp.float32), axis=-1)
    nll = -jnp.take_along_axis(logprobs, target[:, None], axis=-1)[:, 0]
    smooth = -jnp.mean(logprobs, axis=-1)
    return jnp.mean(confidence * nll + smoothing * smooth)


if __name__ == "__main__":
    key = jax.random.PRNGKey(0)
    kx, kt = jax.random.split(key)

    # Primary small case: batch=8, classes=32 (single tile).
    N, C = 8, 32
    x = jax.random.normal(kx, (N, C), dtype=jnp.float32)
    target = jax.random.randint(kt, (N,), 0, C, dtype=jnp.int32)
    loss = jax.block_until_ready(label_smoothing_loss(x, target, smoothing=0.1))
    ref = _reference(x, target, smoothing=0.1)
    assert jnp.allclose(loss, ref, atol=1e-5, rtol=1e-5), (loss, ref)

    # Partial-row-tile masking path (N not a multiple of the tile).
    N2 = 12
    x2 = jax.random.normal(kx, (N2, C), dtype=jnp.float32)
    t2 = jax.random.randint(kt, (N2,), 0, C, dtype=jnp.int32)
    loss2 = jax.block_until_ready(label_smoothing_loss(x2, t2, smoothing=0.1))
    ref2 = _reference(x2, t2, smoothing=0.1)
    assert jnp.allclose(loss2, ref2, atol=1e-5, rtol=1e-5), (loss2, ref2)

    # Multi-tile path: exercises the >=4-tile cap, partial-tile masking and
    # the small-block triple-buffered pipeline.
    N3 = 40
    x3 = jax.random.normal(kx, (N3, C), dtype=jnp.float32)
    t3 = jax.random.randint(kt, (N3,), 0, C, dtype=jnp.int32)
    loss3 = jax.block_until_ready(label_smoothing_loss(x3, t3, smoothing=0.1))
    ref3 = _reference(x3, t3, smoothing=0.1)
    assert jnp.allclose(loss3, ref3, atol=1e-5, rtol=1e-5), (loss3, ref3)

    print("KERNEL_OK")
</pallas_src>

<mosaic_0001>
module attributes {stable_mosaic.version = 11 : i64} {
  func.func @_label_smoothing_kernel(%arg0: i32, %arg1: memref<8x32xf32, #tpu.memory_space<vmem>>, %arg2: memref<8x1xi32, #tpu.memory_space<vmem>>, %arg3: memref<1x1xf32, #tpu.memory_space<smem>>) attributes {dimension_semantics = [#tpu.dimension_semantics<parallel>], iteration_bounds = array<i64: 1>, scalar_prefetch = 0 : i64, scratch_operands = 0 : i64, tpu.core_type = #tpu.core_type<tc>, window_params = [{transform_indices = @transform_0, window_bounds = array<i64: 8, 32>}, {transform_indices = @transform_1, window_bounds = array<i64: 8, 1>}, {transform_indices = @transform_2, window_bounds = array<i64: 1, 1>}]} {
    %c0 = arith.constant 0 : index
    %c0_0 = arith.constant 0 : index
    %0 = vector.load %arg1[%c0, %c0_0] : memref<8x32xf32, #tpu.memory_space<vmem>>, vector<8x32xf32>
    %c0_1 = arith.constant 0 : index
    %c0_2 = arith.constant 0 : index
    %1 = vector.load %arg2[%c0_1, %c0_2] : memref<8x1xi32, #tpu.memory_space<vmem>>, vector<8x1xi32>
    %cst = arith.constant dense<0xFF800000> : vector<8xf32>
    %2 = vector.multi_reduction <maximumf>, %0, %cst [1] : vector<8x32xf32> to vector<8xf32>
    %3 = vector.shape_cast %2 : vector<8xf32> to vector<8x1xf32>
    %4 = vector.broadcast %3 : vector<8x1xf32> to vector<8x32xf32>
    %5 = arith.subf %0, %4 : vector<8x32xf32>
    %6 = math.exp %5 : vector<8x32xf32>
    %cst_3 = arith.constant dense<0.000000e+00> : vector<8xf32>
    %7 = vector.multi_reduction <add>, %6, %cst_3 [1] : vector<8x32xf32> to vector<8xf32>
    %8 = vector.shape_cast %7 : vector<8xf32> to vector<8x1xf32>
    %9 = math.log %8 : vector<8x1xf32>
    %10 = tpu.iota {dimensions = array<i32: 1>} : vector<8x32xi32>
    %11 = vector.broadcast %1 : vector<8x1xi32> to vector<8x32xi32>
    %12 = arith.cmpi eq, %10, %11 : vector<8x32xi32>
    %cst_4 = arith.constant 0.903124988 : f32
    %cst_5 = arith.constant 3.125000e-03 : f32
    %13 = vector.broadcast %cst_4 : f32 to vector<8x32xf32>
    %14 = vector.broadcast %cst_5 : f32 to vector<8x32xf32>
    %15 = arith.select %12, %13, %14 : vector<8x32xi1>, vector<8x32xf32>
    %16 = arith.mulf %5, %15 : vector<8x32xf32>
    %cst_6 = arith.constant dense<0.000000e+00> : vector<8xf32>
    %17 = vector.multi_reduction <add>, %16, %cst_6 [1] : vector<8x32xf32> to vector<8xf32>
    %18 = vector.shape_cast %17 : vector<8xf32> to vector<8x1xf32>
    %19 = arith.subf %9, %18 : vector<8x1xf32>
    %20 = vector.shape_cast %19 : vector<8x1xf32> to vector<1x8x1xf32>
    %cst_7 = arith.constant dense<0.000000e+00> : vector<1xf32>
    %21 = vector.multi_reduction <add>, %20, %cst_7 [1, 2] : vector<1x8x1xf32> to vector<1xf32>
    %22 = vector.shape_cast %21 : vector<1xf32> to vector<1x1x1xf32>
    %23 = vector.extract %22[0, 0, 0] : f32 from vector<1x1x1xf32>
    %c0_8 = arith.constant 0 : index
    %c0_9 = arith.constant 0 : index
    %24 = memref.load %arg3[%c0_8, %c0_9] : memref<1x1xf32, #tpu.memory_space<smem>>
    memref.store %23, %arg3[%c0_8, %c0_9] : memref<1x1xf32, #tpu.memory_space<smem>>
    return
  }
  func.func @transform_0(%arg0: i32) -> (i32, i32) {
    %c0_i32 = arith.constant 0 : i32
    %c0_i32_0 = arith.constant 0 : i32
    return %arg0, %c0_i32 : i32, i32
  }
  func.func @transform_1(%arg0: i32) -> (i32, i32) {
    %c0_i32 = arith.constant 0 : i32
    %c0_i32_0 = arith.constant 0 : i32
    return %arg0, %c0_i32 : i32, i32
  }
  func.func @transform_2(%arg0: i32) -> (i32, i32) {
    %c0_i32 = arith.constant 0 : i32
    %c0_i32_0 = arith.constant 0 : i32
    return %arg0, %c0_i32 : i32, i32
  }
}

</mosaic_0001>

<bundles_post_ra>
// kernel: tpu_custom_call.1
= control target key start
LH: loop header
LB: loop body
LE: loop exit
PB: predicated region body
PF: predicated region fallthrough
CT: control target
= control target key end

     0   :  { %vm14_vm0 = vcmask 261120   ;;  %s120_s0 = inlined_call_operand.vmem [shape: f32[8,32], index: 0, kind: input, shape index: {}]   ;;  %s121_s1 = inlined_call_operand.vmem [shape: s32[8,1], index: 1, kind: input, shape index: {}]   ;;  %s122_s2 = inlined_call_operand.hbm [shape: f32[1,1], index: 2, kind: output, shape index: {}]  }
   0x1   :  { %v12_v0 = vld [vmem:[%s120_s0] sm:$0xff] }
   0x2   :  { %7 = vsyncpa [#allocation3], 0  ;;  %v15_v1 = vsel %vm14_vm0, %v12_v0, -inf  ;;  %v90_v2 = vmov 0   ;;  %v13_v3 = vld [vmem:[%s121_s1] sm:$0xff]  ;;  %v26_v9 = vlaneseq  ;;  %vm38_vm2 = vcmask 7168  }
   0x3   :  { %71 = vset.pattern.permute.xlu0 %v90_v2  ;;  %v91_v12 = vmov 0.003125   ;;  %s56_s13 = sshll.u32 %s122_s2, 4  ;;  %s92_s15 = smov [#allocation2]   ;;  %s57_s13 = int_to_ptr.hbm [resolvable:$true] %s56_s13 }
   0x4   :  { %16 = vmax.xlane.f32.xlu0 %v15_v1  ;;  %v27_v10 = vand.u32 127, %v26_v9 }
  0x18   :  { %29 = vperm.xlu0 %71, %v13_v3  }
  0x77   :  { %v17_v4 = vpop.xlane.xlu0 %16 }
  0x78   :  { %v18_v5 = vsub.f32 %v12_v0, %v17_v4 }
  0x7a   :  { %v19_v6 = vmul.f32 1.442695, %v18_v5 }
  0x7c   :  { %72 = vpow2.f32 %v19_v6 }
  0x82   :  { %v73_v7 = vpop.eup %72 }
  0x83   :  { %v21_v8 = vsel %vm14_vm0, %v73_v7, 0.0 }
  0x84   :  { %22 = vadd.xlane.f32.xlu1 %v21_v8 }
  0x8a   :  { %v30_v11 = vpop.permute.xlu0 %29 }
  0x8b   :  { %vm31_vm1 = vcmp.eq.s32.totalorder %v27_v10, %v30_v11 }
  0x8c   :  { %v32_v13 = vsel %vm31_vm1, 0.903125, %v91_v12 }
  0x8d   :  { %v33_v14 = vmul.f32 %v32_v13, %v18_v5 }
  0x8f   :  { %v34_v15 = vsel %vm14_vm0, %v33_v14, 0.0 }
  0x90   :  { %35 = vadd.xlane.f32.xlu1 %v34_v15 }
  0xf7   :  { %v23_v16 = vpop.xlane.xlu1 %22 }
  0xf8   :  { %74 = vlog2.f32 %v23_v16 }
  0xfe   :  { %v75_v17 = vpop.eup %74 }
  0xff   :  { %v25_v18 = vmul.f32 0.6931472, %v75_v17 }
 0x103   :  { %v36_v19 = vpop.xlane.xlu1 %35 }
 0x104   :  { %v37_v20 = vsub.f32 %v25_v18, %v36_v19 }
 0x106   :  { %v39_v21 = vsel %vm38_vm2, %v37_v20, 0.0 }
 0x107   :  { %40 = vadd.xlane.f32.xlu2 %v39_v21 }
 0x17a   :  { %v41_v22 = vpop.xlane.xlu2 %40 }
 0x17b   :  { %v42_v23 = vrot.slane %v41_v22, 4 }
 0x17d   :  { %v43_v24 = vadd.f32 %v42_v23, %v41_v22 }
 0x17f   :  { %v44_v25 = vrot.slane %v43_v24, 2 }
 0x181   :  { %v45_v26 = vadd.f32 %v44_v25, %v43_v24 }
 0x183   :  { %v46_v27 = vrot.slane %v45_v26, 1 }
 0x185   :  { %v47_v28 = vadd.f32 %v46_v27, %v45_v26 }
 0x187   :  { %66 = vpush %v47_v28 }
 0x1b8   :  { %s67_s14 = spop %66 }
 0x1b9   :  { %50 = sst [smem:[#allocation2]] %s67_s14 }
 0x1ba   :  { %59 = dma.smem_to_hbm %s92_s15, 16, %s57_s13, [#allocation3]  }
 0x1bb   :  { %88 = dma.done.wait [#allocation3], 16  }
 0x1bc   :  { %89 = vsyncadd [#allocation3], 4294967280 }
 0x1bd   :  { %64 = sfence }
 0x1be   :  { %65 = vsyncpa [#allocation3], 1 }

</bundles_post_ra>
